<compile_context>
chip_gen: v5e
topology: v5e:2x2
jax: 0.10.0
libtpu: 0.0.40
codegen_flags: <defaults>
</compile_context>

<pallas_src>
import functools

import jax
import jax.numpy as jnp
from jax import lax
from jax.experimental import pallas as pl
from jax.experimental.pallas import tpu as pltpu


def _autoencoder_kernel(xt_ref, w_ref, enc_t_ref, out_ref, *,
                        cast_operands_bf16=False):
    # xt_ref:    (E, TB)  encoder-output tile, transposed (lane-dense)
    # w_ref:     (D, E)   decoder weight, PyTorch nn.Linear layout, VMEM-resident
    # enc_t_ref: (E, TB)  normalized abundances, transposed (lane-dense store)
    # out_ref:   (TB, D)  reconstructed-signal tile
    xt = xt_ref[...].astype(jnp.float32)                    # (E, TB)
    e = xt.shape[0]

    # x.sum(dim=1) == sum over the E sublane rows: pure VPU, no XLU reduce.
    col_sum = xt[0:1, :]
    for i in range(1, e):                                   # E is static & tiny
        col_sum = col_sum + xt[i:i + 1, :]                  # (1, TB)

    # encoded = x / row_sum  (exact reciprocal for parity with torch divide)
    inv = pl.reciprocal(col_sum, approx=False)              # (1, TB)
    enc_t = xt * inv                                        # (E, TB) sublane bcast
    enc_t_ref[...] = enc_t.astype(enc_t_ref.dtype)

    # out = encoded @ W.T : contract endmember axis of enc_t (dim 0) against
    # the PyTorch-layout weight's in_features axis (dim 1) -> (TB, D).
    w = w_ref[...]
    if cast_operands_bf16:
        lhs = enc_t.astype(jnp.bfloat16)
        rhs = w.astype(jnp.bfloat16)
    else:
        lhs = enc_t
        rhs = w.astype(jnp.float32)
    out = lax.dot_general(lhs, rhs, (((0,), (1,)), ((), ())),
                          preferred_element_type=jnp.float32)  # (TB, D)
    out_ref[...] = out.astype(out_ref.dtype)


def _round_up(v, m):
    return ((v + m - 1) // m) * m


def autoencoder_forward(x, weight, *, block_batch=8192, out_dtype=None):
    """x: (B, n_endmembers); weight: (input_shape, n_endmembers) in PyTorch
    nn.Linear layout.  Returns (encoded, out) matching the PyTorch module.
    out_dtype: dtype of the reconstruction output (e.g. jnp.bfloat16 to halve
    the dominant HBM writeback); in-kernel math is f32 regardless."""
    B, E = x.shape
    D, E2 = weight.shape
    assert E == E2, "weight in_features must match n_endmembers"
    out_dtype = x.dtype if out_dtype is None else out_dtype

    # Batch tile: multiple of 128 so the (E, tb) x^T / encoded^T blocks are
    # lane-dense and the (tb, D) out block is sublane-aligned.  Guarantee >= 2
    # grid steps when B allows it (megacore on v7x + software pipelining on
    # all generations), capped by block_batch.  Sweep block_batch per chip.
    if B <= 128:
        tb = B                      # single tile; full-dim block shapes are legal
    else:
        cap = max(_round_up(block_batch, 128), 128)
        tb = min(_round_up(pl.cdiv(B, 2), 128), cap)
    grid = (pl.cdiv(B, tb),)

    # Wrapper-side transpose of the tiny (B, E) input (E is ~4, negligible HBM
    # traffic vs. the (B, D) output) buys lane-dense kernel loads.
    x_t = x.T                                                # (E, B)

    kernel = functools.partial(
        _autoencoder_kernel,
        cast_operands_bf16=(jnp.dtype(out_dtype) == jnp.dtype(jnp.bfloat16)),
    )

    enc_t, out = pl.pallas_call(
        kernel,
        out_shape=(
            jax.ShapeDtypeStruct((E, B), x.dtype),           # encoded^T (lane-dense)
            jax.ShapeDtypeStruct((B, D), out_dtype),         # reconstruction
        ),
        grid=grid,
        in_specs=[
            pl.BlockSpec((E, tb), lambda i: (0, i)),         # batch tile of x^T
            pl.BlockSpec((D, E), lambda i: (0, 0)),          # weight resident in VMEM
        ],
        out_specs=(
            pl.BlockSpec((E, tb), lambda i: (0, i)),         # encoded^T tile
            pl.BlockSpec((tb, D), lambda i: (i, 0)),         # reconstruction tile
        ),
        compiler_params=pltpu.CompilerParams(
            # Independent batch tiles -> shard across both TensorCores on v7x.
            dimension_semantics=("parallel",),
        ),
    )(x_t, weight)

    # Tiny (E, B) -> (B, E) glue transpose back to the PyTorch output layout.
    return enc_t.T, out


if __name__ == "__main__":
    # Small shapes consistent with the forward: batch tiles of abundances over
    # n_endmembers=4, decoded to input_shape=128 spectral bands.
    B, n_endmembers, input_shape = 512, 4, 128

    key = jax.random.PRNGKey(0)
    kx, kw = jax.random.split(key)

    # Positive activations so the sum-normalization is well defined.
    x = jax.random.uniform(kx, (B, n_endmembers), dtype=jnp.float32,
                           minval=0.1, maxval=1.0)
    # Decoder weight in PyTorch Linear layout (out_features, in_features).
    weight = jax.random.normal(kw, (input_shape, n_endmembers),
                               dtype=jnp.float32) * 0.1

    # Reference (same math as the PyTorch module).
    enc_ref = x / jnp.sum(x, axis=1, keepdims=True)
    out_ref = enc_ref @ weight.T

    # block_batch=128 -> grid of 4 batch tiles, exercising the pipelined path.
    encoded, out = autoencoder_forward(x, weight, block_batch=128)
    jax.block_until_ready((encoded, out))
    assert encoded.shape == (B, n_endmembers) and out.shape == (B, input_shape)
    assert jnp.allclose(encoded, enc_ref, atol=2e-3, rtol=2e-3)
    assert jnp.allclose(out, out_ref, atol=2e-3, rtol=2e-3)
    assert jnp.allclose(jnp.sum(encoded, axis=1), 1.0, atol=5e-3)

    # Ragged final tile (B % tb != 0): padded rows are masked on store.
    Br = 200
    xr = x[:Br]
    enc_r, out_r = autoencoder_forward(xr, weight, block_batch=128)
    jax.block_until_ready((enc_r, out_r))
    assert jnp.allclose(enc_r, enc_ref[:Br], atol=2e-3, rtol=2e-3)
    assert jnp.allclose(out_r, out_ref[:Br], atol=2e-3, rtol=2e-3)

    # bf16 reconstruction output (halves the dominant HBM writeback).
    enc_b, out_b = autoencoder_forward(x, weight, block_batch=128,
                                       out_dtype=jnp.bfloat16)
    jax.block_until_ready((enc_b, out_b))
    assert out_b.dtype == jnp.bfloat16
    assert jnp.allclose(out_b.astype(jnp.float32), out_ref, atol=2e-2, rtol=2e-2)
    assert jnp.allclose(enc_b, enc_ref, atol=2e-3, rtol=2e-3)

    print("KERNEL_OK")
</pallas_src>

<mosaic_0001>
module attributes {stable_mosaic.version = 11 : i64} {
  func.func @_autoencoder_kernel(%arg0: i32, %arg1: memref<4x128xf32, #tpu.memory_space<vmem>>, %arg2: memref<128x4xf32, #tpu.memory_space<vmem>>, %arg3: memref<4x128xf32, #tpu.memory_space<vmem>>, %arg4: memref<128x128xf32, #tpu.memory_space<vmem>>) attributes {dimension_semantics = [#tpu.dimension_semantics<parallel>], iteration_bounds = array<i64: 4>, scalar_prefetch = 0 : i64, scratch_operands = 0 : i64, tpu.core_type = #tpu.core_type<tc>, window_params = [{transform_indices = @transform_0, window_bounds = array<i64: 4, 128>}, {pipeline_mode = #tpu.pipeline_mode<synchronous>, transform_indices = @transform_1, window_bounds = array<i64: 128, 4>}, {transform_indices = @transform_2, window_bounds = array<i64: 4, 128>}, {transform_indices = @transform_3, window_bounds = array<i64: 128, 128>}]} {
    %c0 = arith.constant 0 : index
    %c0_0 = arith.constant 0 : index
    %0 = vector.load %arg1[%c0, %c0_0] : memref<4x128xf32, #tpu.memory_space<vmem>>, vector<4x128xf32>
    %1 = vector.extract_strided_slice %0 {offsets = [0, 0], sizes = [1, 128], strides = [1, 1]} : vector<4x128xf32> to vector<1x128xf32>
    %2 = vector.extract_strided_slice %0 {offsets = [1, 0], sizes = [1, 128], strides = [1, 1]} : vector<4x128xf32> to vector<1x128xf32>
    %3 = arith.addf %1, %2 : vector<1x128xf32>
    %4 = vector.extract_strided_slice %0 {offsets = [2, 0], sizes = [1, 128], strides = [1, 1]} : vector<4x128xf32> to vector<1x128xf32>
    %5 = arith.addf %3, %4 : vector<1x128xf32>
    %6 = vector.extract_strided_slice %0 {offsets = [3, 0], sizes = [1, 128], strides = [1, 1]} : vector<4x128xf32> to vector<1x128xf32>
    %7 = arith.addf %5, %6 : vector<1x128xf32>
    %8 = tpu.reciprocal %7 : vector<1x128xf32> -> vector<1x128xf32>
    %9 = vector.broadcast %8 : vector<1x128xf32> to vector<4x128xf32>
    %10 = arith.mulf %0, %9 : vector<4x128xf32>
    %c0_1 = arith.constant 0 : index
    %c0_2 = arith.constant 0 : index
    %11 = vector.load %arg3[%c0_1, %c0_2] : memref<4x128xf32, #tpu.memory_space<vmem>>, vector<4x128xf32>
    tpu.vector_store %arg3[%c0_1, %c0_2], %10 {strides = array<i32>} : memref<4x128xf32, #tpu.memory_space<vmem>>, vector<4x128xf32>,
    %c0_3 = arith.constant 0 : index
    %c0_4 = arith.constant 0 : index
    %12 = vector.load %arg2[%c0_3, %c0_4] : memref<128x4xf32, #tpu.memory_space<vmem>>, vector<128x4xf32>
    %cst = arith.constant dense<0.000000e+00> : vector<128x128xf32>
    %13 = tpu.matmul %10, %12, %cst {dimension_numbers = #tpu.dot_dimension_numbers<[0], [1], [1], [0], [0, 1, 1, 0], [], []>} : vector<4x128xf32>, vector<128x4xf32>, vector<128x128xf32> -> vector<128x128xf32>
    %c0_5 = arith.constant 0 : index
    %c0_6 = arith.constant 0 : index
    %14 = vector.load %arg4[%c0_5, %c0_6] : memref<128x128xf32, #tpu.memory_space<vmem>>, vector<128x128xf32>
    tpu.vector_store %arg4[%c0_5, %c0_6], %13 {strides = array<i32>} : memref<128x128xf32, #tpu.memory_space<vmem>>, vector<128x128xf32>,
    return
  }
  func.func @transform_0(%arg0: i32) -> (i32, i32) {
    %c0_i32 = arith.constant 0 : i32
    %c0_i32_0 = arith.constant 0 : i32
    return %c0_i32, %arg0 : i32, i32
  }
  func.func @transform_1(%arg0: i32) -> (i32, i32) {
    %c0_i32 = arith.constant 0 : i32
    %c0_i32_0 = arith.constant 0 : i32
    %c0_i32_1 = arith.constant 0 : i32
    return %c0_i32, %c0_i32_0 : i32, i32
  }
  func.func @transform_2(%arg0: i32) -> (i32, i32) {
    %c0_i32 = arith.constant 0 : i32
    %c0_i32_0 = arith.constant 0 : i32
    return %c0_i32, %arg0 : i32, i32
  }
  func.func @transform_3(%arg0: i32) -> (i32, i32) {
    %c0_i32 = arith.constant 0 : i32
    %c0_i32_0 = arith.constant 0 : i32
    return %arg0, %c0_i32 : i32, i32
  }
}

</mosaic_0001>

<bundles_post_ra>
// kernel: tpu_custom_call.1
= control target key start
LH: loop header
LB: loop body
LE: loop exit
PB: predicated region body
PF: predicated region fallthrough
CT: control target
= control target key end

     0   :  { %9 = vsyncpa [#allocation3], 0  ;;  %s1080_s0 = inlined_call_operand.vmem [shape: f32[4,512], index: 0, kind: input, shape index: {}]   ;;  %s1081_s1 = inlined_call_operand.vmem [shape: f32[128,4], index: 1, kind: input, shape index: {}]   ;;  %s1082_s2 = inlined_call_operand.hbm [shape: f32[4,512], index: 2, kind: output, shape index: {0}]   ;;  %s1083_s3 = inlined_call_operand.hbm [shape: f32[512,128], index: 3, kind: output, shape index: {1}]  }
   0x1   :  { %11 = vsyncpa [#allocation3 + $0x1], 0 }
   0x2   :  { %12 = vsyncpa [#allocation5], 0 }
   0x3   :  { %14 = vsyncpa [#allocation5 + $0x1], 0  ;;  %s824_s12 = smov 0   ;;  %s826_s13 = smov 0  }
   0x4   :  { %s828_s14 = smov 0   ;;  %s830_s15 = smov 0  }
   0x5 LB: > { %s845_s16 = sadd.s32 4294967295, %s800_s15   ;;  %s562_s17 = sadd.s32 4294967294, %s800_s15   ;;  %s800_s15 = sphi %s830_s15, %s1089_s15   ;;  %s796_s14 = sphi %s828_s14, %s1088_s14   ;;  %s792_s13 = sphi %s826_s13, %s1087_s13   ;;  %s788_s12 = sphi %s824_s12, %s1086_s12  }
   0x6   : > { %s849_s18 = sadd.s32 1, %s800_s15   ;;  %s74_s19 = sadd.s32 1, %s796_s14 }
   0x7   : > { %s71_s20 = ssub.s32 %s800_s15, %s849_s18  ;;  %p84_p0 = scmp.ne.s32.totalorder %s796_s14, %s792_s13 }
   0x8   : > { %p72_p1 = scmp.eq.s32.totalorder %s71_s20, 0  ;;  %p85_p2 = scmp.eq.s32.totalorder %s845_s16, 3 }
   0x9   : > { %p90_p3 = scmp.ne.s32.totalorder %s792_s13, %s788_s12  ;;  %p91_p4 = scmp.eq.s32.totalorder %s562_s17, 3 }
   0xa   : > { %s860_s21 = scalar_select %p72_p1, %s796_s14, %s74_s19  }
   0xb   : > { %p862_p5 = por %p85_p2, %p84_p0  ;;  %p866_p6 = por %p91_p4, %p90_p3 }
   0xc   : > { %p565_p7 = scmp.ge.s32.totalorder %s800_s15, 1  ;;  %p145_p8 = scmp.lt.s32.totalorder %s800_s15, 5 }
   0xe   : > { %p146_p9 = pnand %p565_p7, %p145_p8 }
   0xf   : > { %p173_p10 = scmp.lt.s32.totalorder (!%p146_p9), %s845_s16, 3  ;;  %s603_s28 = sshll.u32 (!%p146_p9), %s845_s16, 2 }
  0x10   : > { %149 = sbr.rel (%p146_p9) target bundleno = 476 (0x1dc), region = 28  ;;  %s448_s4 = scalar_lea.hbm (!%p146_p9), %s1082_s2, %s603_s28 }
  0x11   : > { %s452_s7 = sshll.u32 (!%p146_p9), %s448_s4, 4  ;;  %s726_s20 = scalar_lea.hbm (!%p146_p9), %s1082_s2, 16  ;;  %s453_s7 = int_to_ptr.hbm [resolvable:$true] %s452_s7 }
  0x12   : > { %s720_s10 = sshra.s32 (!%p146_p9), %s453_s7, 4  ;;  %s721_s10 = int_to_ptr.hbm [resolvable:$true] %s720_s10 }
  0x13   : > { %s722_s11 = scalar_lea.hbm (!%p146_p9), %s721_s10, 4  ;;  %p727_p0 = scmp.lt.s32.totalorder (!%p146_p9), %s721_s10, %s1082_s2 }
  0x14   : > { %p723_p11 = scmp.ne.s32.totalorder (!%p146_p9), %s721_s10, %s722_s11  ;;  %p728_p1 = scmp.lt.s32.totalorder (!%p146_p9), %s726_s20, %s722_s11 }
  0x15   : > { %s174_s24 = scalar_select %p173_p10, %s845_s16, 3  ;;  %v221_v0 = vld [vmem:[%s1081_s1 + $0x78] sm:$0xff]  ;;  %vm254_vm0 = vcmask 31744   ;;  %v220_v2 = vld [vmem:[%s1081_s1 + $0x70] sm:$0xff]  ;;  %v219_v7 = vld [vmem:[%s1081_s1 + $0x68] sm:$0xff] }
  0x16   : > { %569 = vmatpush.xpose.msk.msra.mxu0 %vm254_vm0, %v221_v0  ;;  %609 = vmatpush.xpose.msk.msra.mxu1 %vm254_vm0, %v221_v0  ;;  %v218_v10 = vld [vmem:[%s1081_s1 + $0x60] sm:$0xff]  ;;  %v217_v11 = vld [vmem:[%s1081_s1 + $0x58] sm:$0xff]  ;;  %v216_v14 = vld [vmem:[%s1081_s1 + $0x50] sm:$0xff]  ;;  %p724_p12 = pnand %p723_p11, %p862_p5  ;;  %p729_p2 = por %p728_p1, %p727_p0 }
  0x17   : > { %s568_s25 = sshll.u32 %s174_s24, 2  ;;  %610 = vmatpush.xpose.msk.msra.mxu2 %vm254_vm0, %v221_v0  ;;  %611 = vmatpush.xpose.msk.msra.mxu3 %vm254_vm0, %v221_v0  ;;  %v215_v19 = vld [vmem:[%s1081_s1 + $0x48] sm:$0xff]  ;;  %v214_v23 = vld [vmem:[%s1081_s1 + $0x40] sm:$0xff]  ;;  %v213_v27 = vld [vmem:[%s1081_s1 + $0x38] sm:$0xff] }
  0x18   : > { %s176_s30 = scalar_lea.vmem %s1080_s0, %s568_s25  ;;  %v212_v28 = vld [vmem:[%s1081_s1 + $0x30] sm:$0xff]  ;;  %v211_v29 = vld [vmem:[%s1081_s1 + $0x28] sm:$0xff]  ;;  %v210_v30 = vld [vmem:[%s1081_s1 + $0x20] sm:$0xff]  ;;  %s1008_s25 = sand.u32 1, %s792_s13  }
  0x19   : > { %v178_v1 = vld [vmem:[%s176_s30] sm:$0xf]  ;;  %v209_v31 = vld [vmem:[%s1081_s1 + $0x18] sm:$0xff]  ;;  %v208_v32 = vld [vmem:[%s1081_s1 + $0x10] sm:$0xff]  ;;  %s567_s26 = sshll.u32 %s1008_s25, 7  ;;  %s566_s27 = sshll.u32 %s1008_s25, 2 }
  0x1a   : > { %v180_v3 = vrot.slane %v178_v1, 1  ;;  %v183_v4 = vrot.slane %v178_v1, 2  ;;  %v186_v6 = vrot.slane %v178_v1, 3  ;;  %570 = vmatpush.xpose.msk.msra.mxu0 %vm254_vm0, %v220_v2  ;;  %612 = vmatpush.xpose.msk.msra.mxu1 %vm254_vm0, %v220_v2  ;;  %v207_v33 = vld [vmem:[%s1081_s1 + $0x8] sm:$0xff]  ;;  %v206_v34 = vld [vmem:[%s1081_s1] sm:$0xff]  ;;  %s165_s5 = scalar_lea.vmem [#allocation2], %s566_s27  ;;  %p725_p13 = pneg %p724_p12 }
  0x1b   : > { %613 = vmatpush.xpose.msk.msra.mxu2 %vm254_vm0, %v220_v2  ;;  %614 = vmatpush.xpose.msk.msra.mxu3 %vm254_vm0, %v220_v2  ;;  %s450_s6 = sshll.u32 %s165_s5, 4  ;;  %s1018_s8 = scalar_lea.vmem [#allocation4], %s567_s26  ;;  %s451_s6 = int_to_ptr.vmem [resolvable:$true] %s450_s6 }
  0x1c   : > { %v182_v5 = vadd.f32 %v180_v3, %v178_v1  ;;  %s433_s9 = scalar_lea.sflag [#allocation3], %s1008_s25  ;;  %p730_p3 = pnand %p729_p2, %p725_p13 }
  0x1e   : > { %v185_v8 = vadd.f32 %v183_v4, %v182_v5  ;;  %571 = vmatpush.xpose.msk.msra.mxu0 %vm254_vm0, %v219_v7  ;;  %615 = vmatpush.xpose.msk.msra.mxu1 %vm254_vm0, %v219_v7 }
  0x1f   : > { %616 = vmatpush.xpose.msk.msra.mxu2 %vm254_vm0, %v219_v7  ;;  %617 = vmatpush.xpose.msk.msra.mxu3 %vm254_vm0, %v219_v7 }
  0x20   : > { %v188_v9 = vadd.f32 %v186_v6, %v185_v8 }
  0x22   : > { %704 = vrcp.f32 %v188_v9  ;;  %572 = vmatpush.xpose.msk.msra.mxu0 %vm254_vm0, %v218_v10  ;;  %618 = vmatpush.xpose.msk.msra.mxu1 %vm254_vm0, %v218_v10  ;;  %v200_v15 = vand.u32 2147483648, %v188_v9  ;;  %vm194_vm1 = vweird.f32 %v188_v9  ;;  %v198_v17 = vand.u32 2147483647, %v188_v9 }
  0x23   : > { %619 = vmatpush.xpose.msk.msra.mxu2 %vm254_vm0, %v218_v10  ;;  %620 = vmatpush.xpose.msk.msra.mxu3 %vm254_vm0, %v218_v10 }
  0x24   : > { %v201_v20 = vor.u32 1.1754944e-38, %v200_v15  ;;  %vm199_vm4 = vcmp.eq.f32.partialorder %v198_v17, 8.507059e+37 }
  0x26   : > { %573 = vmatpush.xpose.msk.msra.mxu0 %vm254_vm0, %v217_v11  ;;  %621 = vmatpush.xpose.msk.msra.mxu1 %vm254_vm0, %v217_v11 }
  0x27   : > { %622 = vmatpush.xpose.msk.msra.mxu2 %vm254_vm0, %v217_v11  ;;  %623 = vmatpush.xpose.msk.msra.mxu3 %vm254_vm0, %v217_v11 }
  0x28   : > { %v705_v12 = vpop.eup %704 }
  0x29   : > { %v190_v13 = vmul.f32 %v705_v12, %v188_v9  ;;  %vm195_vm2 = vweird.f32 %v705_v12 }
  0x2a   : > { %574 = vmatpush.xpose.msk.msra.mxu0 %vm254_vm0, %v216_v14  ;;  %624 = vmatpush.xpose.msk.msra.mxu1 %vm254_vm0, %v216_v14  ;;  %vm196_vm3 = vmor %vm194_vm1, %vm195_vm2 }
  0x2b   : > { %v191_v16 = vsub.f32 1.0, %v190_v13  ;;  %625 = vmatpush.xpose.msk.msra.mxu2 %vm254_vm0, %v216_v14  ;;  %626 = vmatpush.xpose.msk.msra.mxu3 %vm254_vm0, %v216_v14 }
  0x2d   : > { %v192_v18 = vmul.f32 %v705_v12, %v191_v16 }
  0x2e   : > { %575 = vmatpush.xpose.msk.msra.mxu0 %vm254_vm0, %v215_v19  ;;  %627 = vmatpush.xpose.msk.msra.mxu1 %vm254_vm0, %v215_v19 }
  0x2f   : > { %v193_v21 = vadd.f32 %v705_v12, %v192_v18  ;;  %628 = vmatpush.xpose.msk.msra.mxu2 %vm254_vm0, %v215_v19  ;;  %629 = vmatpush.xpose.msk.msra.mxu3 %vm254_vm0, %v215_v19 }
  0x31   : > { %v197_v22 = vsel %vm196_vm3, %v705_v12, %v193_v21 }
  0x32   : > { %v202_v24 = vsel %vm199_vm4, %v201_v20, %v197_v22  ;;  %576 = vmatpush.xpose.msk.msra.mxu0 %vm254_vm0, %v214_v23  ;;  %630 = vmatpush.xpose.msk.msra.mxu1 %vm254_vm0, %v214_v23 }
  0x33   : > { %v203_v25 = vperm.slane %v202_v24, 0  ;;  %631 = vmatpush.xpose.msk.msra.mxu2 %vm254_vm0, %v214_v23  ;;  %632 = vmatpush.xpose.msk.msra.mxu3 %vm254_vm0, %v214_v23 }
  0x35   : > { %v931_v26 = vmul.f32 %v203_v25, %v178_v1 }
  0x36   : > { %577 = vmatpush.xpose.msk.msra.mxu0 %vm254_vm0, %v213_v27  ;;  %633 = vmatpush.xpose.msk.msra.mxu1 %vm254_vm0, %v213_v27 }
  0x37   : > { %222 = vxpose.xlu0.b32.start.end [1/1] (short) %v931_v26, 128  ;;  %634 = vmatpush.xpose.msk.msra.mxu2 %vm254_vm0, %v213_v27  ;;  %205 = vst [vmem:[%s165_s5] sm:$0xf] %v931_v26 }
  0x38   : > { %635 = vmatpush.xpose.msk.msra.mxu3 %vm254_vm0, %v213_v27 }
  0x3a   : > { %578 = vmatpush.xpose.msk.msra.mxu0 %vm254_vm0, %v212_v28  ;;  %636 = vmatpush.xpose.msk.msra.mxu1 %vm254_vm0, %v212_v28 }
  0x3b   : > { %637 = vmatpush.xpose.msk.msra.mxu2 %vm254_vm0, %v212_v28 }
  0x3c   : > { %638 = vmatpush.xpose.msk.msra.mxu3 %vm254_vm0, %v212_v28 }
  0x3e   : > { %579 = vmatpush.xpose.msk.msra.mxu0 %vm254_vm0, %v211_v29  ;;  %639 = vmatpush.xpose.msk.msra.mxu1 %vm254_vm0, %v211_v29 }
  0x3f   : > { %640 = vmatpush.xpose.msk.msra.mxu2 %vm254_vm0, %v211_v29 }
  0x40   : > { %641 = vmatpush.xpose.msk.msra.mxu3 %vm254_vm0, %v211_v29 }
  0x42   : > { %580 = vmatpush.xpose.msk.msra.mxu0 %vm254_vm0, %v210_v30  ;;  %642 = vmatpush.xpose.msk.msra.mxu1 %vm254_vm0, %v210_v30 }
  0x43   : > { %643 = vmatpush.xpose.msk.msra.mxu2 %vm254_vm0, %v210_v30 }
  0x44   : > { %644 = vmatpush.xpose.msk.msra.mxu3 %vm254_vm0, %v210_v30 }
  0x46   : > { %581 = vmatpush.xpose.msk.msra.mxu0 %vm254_vm0, %v209_v31  ;;  %645 = vmatpush.xpose.msk.msra.mxu1 %vm254_vm0, %v209_v31 }
  0x47   : > { %646 = vmatpush.xpose.msk.msra.mxu2 %vm254_vm0, %v209_v31 }
  0x48   : > { %647 = vmatpush.xpose.msk.msra.mxu3 %vm254_vm0, %v209_v31 }
  0x4a   : > { %582 = vmatpush.xpose.msk.msra.mxu0 %vm254_vm0, %v208_v32  ;;  %648 = vmatpush.xpose.msk.msra.mxu1 %vm254_vm0, %v208_v32 }
  0x4b   : > { %649 = vmatpush.xpose.msk.msra.mxu2 %vm254_vm0, %v208_v32 }
  0x4c   : > { %650 = vmatpush.xpose.msk.msra.mxu3 %vm254_vm0, %v208_v32 }
  0x4e   : > { %583 = vmatpush.xpose.msk.msra.mxu0 %vm254_vm0, %v207_v33  ;;  %651 = vmatpush.xpose.msk.msra.mxu1 %vm254_vm0, %v207_v33 }
  0x4f   : > { %652 = vmatpush.xpose.msk.msra.mxu2 %vm254_vm0, %v207_v33 }
  0x50   : > { %653 = vmatpush.xpose.msk.msra.mxu3 %vm254_vm0, %v207_v33 }
  0x52   : > { %584 = vmatpush.xpose.msk.msra.mxu0 %vm254_vm0, %v206_v34  ;;  %654 = vmatpush.xpose.msk.msra.mxu1 %vm254_vm0, %v206_v34 }
  0x53   : > { %655 = vmatpush.xpose.msk.msra.mxu2 %vm254_vm0, %v206_v34 }
  0x54   : > { %656 = vmatpush.xpose.msk.msra.mxu3 %vm254_vm0, %v206_v34 }
  0xdb   : > { %v238_v35 = vpop.trf.xlu0 }
  0xdc   : > { %585 = vmatmul.msk.f32.vlgmr.msra.gmra.mxu0 %vm254_vm0, %v238_v35 }
  0xe3   : > { %v239_v36 = vpop.trf.xlu0 }
  0xe4   : > { %586 = vmatmul.msk.f32.gmra.mxu0 %vm254_vm0, %v239_v36 }
  0xeb   : > { %v240_v37 = vpop.trf.xlu0 }
  0xec   : > { %587 = vmatmul.msk.f32.gmra.mxu0 %vm254_vm0, %v240_v37 }
  0xf3   : > { %v241_v38 = vpop.trf.xlu0 }
  0xf4   : > { %588 = vmatmul.msk.f32.gmra.mxu0 %vm254_vm0, %v241_v38 }
  0xfb   : > { %v242_v39 = vpop.trf.xlu0 }
  0xfc   : > { %589 = vmatmul.msk.f32.vlgmr.msra.gmra.mxu1 %vm254_vm0, %v242_v39 }
 0x103   : > { %v243_v40 = vpop.trf.xlu0 }
 0x104   : > { %590 = vmatmul.msk.f32.gmra.mxu1 %vm254_vm0, %v243_v40 }
 0x10b   : > { %v244_v41 = vpop.trf.xlu0 }
 0x10c   : > { %591 = vmatmul.msk.f32.gmra.mxu1 %vm254_vm0, %v244_v41 }
 0x113   : > { %v245_v42 = vpop.trf.xlu0 }
 0x114   : > { %592 = vmatmul.msk.f32.gmra.mxu1 %vm254_vm0, %v245_v42 }
 0x11b   : > { %v246_v43 = vpop.trf.xlu0 }
 0x11c   : > { %593 = vmatmul.msk.f32.vlgmr.msra.gmra.mxu2 %vm254_vm0, %v246_v43 }
 0x123   : > { %v247_v44 = vpop.trf.xlu0 }
 0x124   : > { %594 = vmatmul.msk.f32.gmra.mxu2 %vm254_vm0, %v247_v44 }
 0x12b   : > { %v248_v45 = vpop.trf.xlu0 }
 0x12c   : > { %595 = vmatmul.msk.f32.gmra.mxu2 %vm254_vm0, %v248_v45 }
 0x133   : > { %v249_v46 = vpop.trf.xlu0 }
 0x134   : > { %596 = vmatmul.msk.f32.gmra.mxu2 %vm254_vm0, %v249_v46 }
 0x13b   : > { %v250_v47 = vpop.trf.xlu0 }
 0x13c   : > { %597 = vmatmul.msk.f32.vlgmr.msra.gmra.mxu3 %vm254_vm0, %v250_v47 }
 0x143   : > { %v251_v48 = vpop.trf.xlu0 }
 0x144   : > { %598 = vmatmul.msk.f32.gmra.mxu3 %vm254_vm0, %v251_v48 }
 0x14b   : > { %v252_v49 = vpop.trf.xlu0 }
 0x14c   : > { %599 = vmatmul.msk.f32.gmra.mxu3 %vm254_vm0, %v252_v49 }
 0x153   : > { %v253_v50 = vpop.trf.xlu0 }
 0x154   : > { %600 = vmatmul.msk.f32.gmra.mxu3 %vm254_vm0, %v253_v50 }
 0x159   : > { %v368_v51 = vpop.f32.mrf.mxu0 }
 0x15a   : > { %416 = vst [vmem:[%s1018_s8] sm:$0xff] %v368_v51 }
 0x15b   : > { %733 = shalt.err (!%p730_p3)
}
 0x15c   : > { %657 = dma.vmem_to_hbm [thread:$0]  (%p862_p5), %s451_s6, 64, %s453_s7, %s433_s9  }
 0x15d   : > { %s608_s26 = sshll.u32 %s845_s16, 7  ;;  %s464_s4 = sshll.u32 %s1018_s8, 4  ;;  %s465_s4 = int_to_ptr.vmem [resolvable:$true] %s464_s4 }
 0x15e   : > { %s463_s30 = scalar_lea.hbm %s1083_s3, %s608_s26  ;;  %s438_s6 = scalar_lea.sflag [#allocation5], %s1008_s25 }
 0x15f   : > { %s466_s5 = sshll.u32 %s463_s30, 4  ;;  %s754_s11 = scalar_lea.hbm %s1083_s3, 512  ;;  %s467_s5 = int_to_ptr.hbm [resolvable:$true] %s466_s5 }
 0x160   : > { %s748_s7 = sshra.s32 %s467_s5, 4  ;;  %s749_s7 = int_to_ptr.hbm [resolvable:$true] %s748_s7 }
 0x161   : > { %v371_v52 = vpop.f32.mrf.mxu0  ;;  %s750_s9 = scalar_lea.hbm %s749_s7, 128  ;;  %p755_p9 = scmp.lt.s32.totalorder %s749_s7, %s1083_s3 }
 0x162   : > { %417 = vst [vmem:[%s1018_s8 + $0x8] sm:$0xff] %v371_v52  ;;  %p751_p4 = scmp.ne.s32.totalorder %s749_s7, %s750_s9  ;;  %p756_p10 = scmp.lt.s32.totalorder %s754_s11, %s750_s9 }
 0x164   : > { %p752_p7 = pnand %p751_p4, %p862_p5  ;;  %p757_p11 = por %p756_p10, %p755_p9 }
 0x166   : > { %p753_p8 = pneg %p752_p7 }
 0x168   : > { %p758_p12 = pnand %p757_p11, %p753_p8 }
 0x169   : > { %v374_v53 = vpop.f32.mrf.mxu0 }
 0x16a   : > { %418 = vst [vmem:[%s1018_s8 + $0x10] sm:$0xff] %v374_v53 }
 0x171   : > { %v377_v54 = vpop.f32.mrf.mxu0 }
 0x172   : > { %419 = vst [vmem:[%s1018_s8 + $0x18] sm:$0xff] %v377_v54 }
 0x179   : > { %v380_v55 = vpop.f32.mrf.mxu1 }
 0x17a   : > { %420 = vst [vmem:[%s1018_s8 + $0x20] sm:$0xff] %v380_v55 }
 0x181   : > { %v383_v56 = vpop.f32.mrf.mxu1 }
 0x182   : > { %421 = vst [vmem:[%s1018_s8 + $0x28] sm:$0xff] %v383_v56 }
 0x189   : > { %v386_v57 = vpop.f32.mrf.mxu1 }
 0x18a   : > { %422 = vst [vmem:[%s1018_s8 + $0x30] sm:$0xff] %v386_v57 }
 0x191   : > { %v389_v58 = vpop.f32.mrf.mxu1 }
 0x192   : > { %423 = vst [vmem:[%s1018_s8 + $0x38] sm:$0xff] %v389_v58 }
 0x19f   : > { %v392_v59 = vpop.f32.mrf.mxu2 }
 0x1a0   : > { %424 = vst [vmem:[%s1018_s8 + $0x40] sm:$0xff] %v392_v59 }
 0x1a7   : > { %v395_v60 = vpop.f32.mrf.mxu2 }
 0x1a8   : > { %425 = vst [vmem:[%s1018_s8 + $0x48] sm:$0xff] %v395_v60 }
 0x1af   : > { %v398_v61 = vpop.f32.mrf.mxu2 }
 0x1b0   : > { %426 = vst [vmem:[%s1018_s8 + $0x50] sm:$0xff] %v398_v61 }
 0x1b7   : > { %v401_v62 = vpop.f32.mrf.mxu2 }
 0x1b8   : > { %427 = vst [vmem:[%s1018_s8 + $0x58] sm:$0xff] %v401_v62 }
 0x1bf   : > { %v404_v63 = vpop.f32.mrf.mxu3 }
 0x1c0   : > { %428 = vst [vmem:[%s1018_s8 + $0x60] sm:$0xff] %v404_v63 }
 0x1c7   : > { %v407_v0 = vpop.f32.mrf.mxu3 }
 0x1c8   : > { %429 = vst [vmem:[%s1018_s8 + $0x68] sm:$0xff] %v407_v0 }
 0x1cf   : > { %v410_v1 = vpop.f32.mrf.mxu3 }
 0x1d0   : > { %430 = vst [vmem:[%s1018_s8 + $0x70] sm:$0xff] %v410_v1 }
 0x1d7   : > { %v413_v2 = vpop.f32.mrf.mxu3 }
 0x1d8   : > { %431 = vst [vmem:[%s1018_s8 + $0x78] sm:$0xff] %v413_v2 }
 0x1d9   : > { %761 = shalt.err (!%p758_p12)
}
 0x1da   : > { %s802_s25 = smov 128   ;;  %s803_s8 = smov 8  }
 0x1db   : > { %658 = dma.vmem_to_hbm [thread:$0]  (%p862_p5), %s465_s4, 2048, %s467_s5, %s438_s6, %s802_s25, %s802_s25, %s803_s8  }
 0x1dc PF: > { %p668_p13 = scmp.ge.s32.totalorder %s800_s15, 2  ;;  %s481_s20 = sand.u32 1, %s788_s12  }
 0x1dd   : > { %s482_s24 = scalar_lea.sflag [#allocation3], %s481_s20 }
 0x1de   : > { %p662_p0 = pnand %p668_p13, %p866_p6 }
 0x1e0   : > { %p663_p1 = pneg %p662_p0 }
 0x1e2   : > { %779 = dma.done.wait (%p663_p1), %s482_s24, 64  }
 0x1e3   : > { %781 = vsyncadd (%p663_p1), %s482_s24, 4294967232  ;;  %s492_s27 = scalar_lea.sflag [#allocation5], %s481_s20 }
 0x1e4   : > { %783 = dma.done.wait (%p663_p1), %s492_s27, 2048  }
 0x1e5   : > { %785 = vsyncadd (%p663_p1), %s492_s27, 4294965248  ;;  %p17_p5 = scmp.ge.s32.totalorder %s849_s18, 6   ;;  %s1086_s12 = smov %s792_s13 }
 0x1e6   : > { %s1087_s13 = smov %s796_s14  ;;  %s1088_s14 = smov %s860_s21 }
 0x1e7   : > { %s1089_s15 = smov %s849_s18  ;;  %19 = sbr.rel (!%p17_p5) target bundleno = 5 (0x5), region = 80 }
 0x1ec   :  { %498 = vsyncpa [#allocation3], 1 }
 0x1ed   :  { %500 = vsyncpa [#allocation3 + $0x1], 1 }
 0x1ee   :  { %501 = vsyncpa [#allocation5], 1 }
 0x1ef   :  { %503 = vsyncpa [#allocation5 + $0x1], 1 }

</bundles_post_ra>
